<compile_context>
chip_gen: v5e
topology: v5e:2x2
jax: 0.10.0
libtpu: 0.0.40
codegen_flags: <defaults>
</compile_context>

<pallas_src>
import jax
import jax.numpy as jnp
from jax.experimental import pallas as pl
from jax.experimental.pallas import tpu as pltpu

FEATURE_DIM = 32
MAX_TILE_ROWS = 4096  # packed rows per grid step; 4096x128 f32 = 2 MiB per buffer


def _round_up(n, m):
    return ((n + m - 1) // m) * m


def _ode_fused_kernel(x_ref, w_ref, b_ref, o_ref):
    """out_tile = x_tile @ W_block + bias_packed   (all lane-dense, 128 lanes)."""
    acc = jnp.dot(x_ref[...], w_ref[...], preferred_element_type=jnp.float32)
    o_ref[...] = (acc + b_ref[...]).astype(o_ref.dtype)


def fuse_params(params):
    """Precompute the fused affine map + lane-dense block weight ONCE per param set."""
    w_fused = params["wf"] @ params["wo"]                                  # (dim_in, dim_in)
    wto = params["wt"] @ params["wo"]                                      # (1, dim_in)
    b_const = (params["bt"] + params["bf"]) @ params["wo"] + params["bo"]  # (1, dim_in)

    dim_in = w_fused.shape[0]
    # Pack `pack` consecutive batch rows into one 128-lane row when possible.
    pack = 128 // dim_in if (dim_in <= 128 and 128 % dim_in == 0) else 1
    # Block-diagonal weight: (packed_row @ W_block) == per-row (x @ W_fused).
    w_block = jnp.kron(jnp.eye(pack, dtype=w_fused.dtype), w_fused)        # (pack*d, pack*d)
    return {
        "w_block": w_block,
        "wto": wto,
        "b_const": b_const,
        "pack": pack,
        "dim_in": dim_in,
    }


def ode_base_func(t, x, fused, *, max_tile_rows=MAX_TILE_ROWS):
    """Fused forward pass of ODE_base_func.

    Args:
      t: scalar ODE time.
      x: (B, dim_in) float32.
      fused: output of fuse_params(params).
    Returns:
      (B, dim_in) float32, matching the PyTorch module up to f32 rounding.
    """
    B, dim_in = x.shape
    assert dim_in == fused["dim_in"]
    pack = fused["pack"]
    lanes = pack * dim_in  # 128 when dim_in divides 128

    # Fold the time term here: a (1, dim_in) op, then tile lane-dense.
    t_f = jnp.asarray(t, jnp.float32)
    bias = t_f * fused["wto"] + fused["b_const"]      # (1, dim_in)
    bias_packed = jnp.tile(bias, (1, pack))           # (1, lanes)

    # Free row-major repack: (B, dim_in) -> (rows, lanes).
    B_pad = _round_up(B, pack)
    if B_pad != B:
        x = jnp.pad(x, ((0, B_pad - B), (0, 0)))
    rows = B_pad // pack
    xp = x.reshape(rows, lanes)

    # Tile rule: full array for tiny inputs; otherwise a multiple-of-8 tile with
    # at least 2 grid steps (megacore on v7x), capped for VMEM.
    if rows <= 8:
        tile_rows = rows
    else:
        tile_rows = min(max_tile_rows, _round_up(pl.cdiv(rows, 2), 8))
    grid = (pl.cdiv(rows, tile_rows),)

    x_spec = pl.BlockSpec((tile_rows, lanes), lambda i: (i, 0))
    w_spec = pl.BlockSpec((lanes, lanes), lambda i: (0, 0))      # VMEM-resident
    b_spec = pl.BlockSpec((1, lanes), lambda i: (0, 0))          # VMEM-resident
    o_spec = pl.BlockSpec((tile_rows, lanes), lambda i: (i, 0))

    cost = pl.CostEstimate(
        flops=2 * rows * lanes * lanes + rows * lanes,
        transcendentals=0,
        bytes_accessed=4 * (2 * rows * lanes + lanes * lanes + lanes),
    )

    out_packed = pl.pallas_call(
        _ode_fused_kernel,
        out_shape=jax.ShapeDtypeStruct((rows, lanes), jnp.float32),
        grid=grid,
        in_specs=[x_spec, w_spec, b_spec],
        out_specs=o_spec,
        compiler_params=pltpu.CompilerParams(
            dimension_semantics=("parallel",),
            vmem_limit_bytes=32 * 1024 * 1024,
        ),
        cost_estimate=cost,
    )(xp, fused["w_block"], bias_packed)

    out = out_packed.reshape(B_pad, dim_in)           # free view back to (B_pad, dim_in)
    return out[:B] if B_pad != B else out


def init_params(key, dim_in, feature_dim=FEATURE_DIM):
    """Deterministic parameter init (mimics nn.Linear uniform fan-in init).

    Weights stored as (in_features, out_features): forward is x @ W + b,
    equivalent to PyTorch's x @ W.T + b.
    """
    ks = jax.random.split(key, 6)

    def lin(kw, kb, fan_in, fan_out):
        bound = 1.0 / jnp.sqrt(jnp.float32(fan_in))
        w = jax.random.uniform(kw, (fan_in, fan_out), jnp.float32, -bound, bound)
        b = jax.random.uniform(kb, (1, fan_out), jnp.float32, -bound, bound)
        return w, b

    wt, bt = lin(ks[0], ks[1], 1, feature_dim)        # model_time: Linear(1, F)
    wf, bf = lin(ks[2], ks[3], dim_in, feature_dim)   # model_feature: Linear(dim_in, F)
    wo, bo = lin(ks[4], ks[5], feature_dim, dim_in)   # model_base: Linear(F, dim_in)
    return {"wt": wt, "bt": bt, "wf": wf, "bf": bf, "wo": wo, "bo": bo}


def ode_base_func_ref(t, x, p):
    """Pure-JAX reference (un-fused, matches the PyTorch module op-for-op)."""
    t_col = jnp.full((x.shape[0], 1), t, jnp.float32)
    time_feat = t_col @ p["wt"] + p["bt"]
    feat = x @ p["wf"] + p["bf"]
    return (time_feat + feat) @ p["wo"] + p["bo"]


if __name__ == "__main__":
    key = jax.random.PRNGKey(0)
    k_param, k_x, k_x2 = jax.random.split(key, 3)

    B, dim_in, T = 2, 4, 1.0          # ODE_base_func(dim_in=4, T=1.0)
    params = init_params(k_param, dim_in)
    fused = fuse_params(params)

    # Small-shape check (matches the module's typical usage).
    x = jax.random.normal(k_x, (B, dim_in), jnp.float32)
    t = 0.5
    out = jax.block_until_ready(ode_base_func(t, x, fused))
    ref = ode_base_func_ref(t, x, params)
    assert out.shape == (B, dim_in)
    assert jnp.allclose(out, ref, atol=1e-4, rtol=1e-4)

    # Exercise the lane-dense repack with padding + multi-tile batch grid
    # (B not a multiple of pack or tile size -> partial last tile).
    B2 = 4100
    x2 = jax.random.normal(k_x2, (B2, dim_in), jnp.float32)
    out2 = jax.block_until_ready(ode_base_func(0.25, x2, fused))
    ref2 = ode_base_func_ref(0.25, x2, params)
    assert out2.shape == (B2, dim_in)
    assert jnp.allclose(out2, ref2, atol=1e-4, rtol=1e-4)

    print("KERNEL_OK")
</pallas_src>

<mosaic_0001>
module attributes {stable_mosaic.version = 11 : i64} {
  func.func @_ode_fused_kernel(%arg0: i32, %arg1: memref<1x128xf32, #tpu.memory_space<vmem>>, %arg2: memref<128x128xf32, #tpu.memory_space<vmem>>, %arg3: memref<1x128xf32, #tpu.memory_space<vmem>>, %arg4: memref<1x128xf32, #tpu.memory_space<vmem>>) attributes {dimension_semantics = [#tpu.dimension_semantics<parallel>], iteration_bounds = array<i64: 1>, scalar_prefetch = 0 : i64, scratch_operands = 0 : i64, tpu.core_type = #tpu.core_type<tc>, window_params = [{transform_indices = @transform_0, window_bounds = array<i64: 1, 128>}, {pipeline_mode = #tpu.pipeline_mode<synchronous>, transform_indices = @transform_1, window_bounds = array<i64: 128, 128>}, {pipeline_mode = #tpu.pipeline_mode<synchronous>, transform_indices = @transform_2, window_bounds = array<i64: 1, 128>}, {transform_indices = @transform_3, window_bounds = array<i64: 1, 128>}]} {
    %c0 = arith.constant 0 : index
    %c0_0 = arith.constant 0 : index
    %0 = vector.load %arg1[%c0, %c0_0] : memref<1x128xf32, #tpu.memory_space<vmem>>, vector<1x128xf32>
    %c0_1 = arith.constant 0 : index
    %c0_2 = arith.constant 0 : index
    %1 = vector.load %arg2[%c0_1, %c0_2] : memref<128x128xf32, #tpu.memory_space<vmem>>, vector<128x128xf32>
    %cst = arith.constant dense<0.000000e+00> : vector<1x128xf32>
    %2 = tpu.matmul %0, %1, %cst {dimension_numbers = #tpu.dot_dimension_numbers<[1], [0], [0], [1], [0, 0, 1, 1], [], []>} : vector<1x128xf32>, vector<128x128xf32>, vector<1x128xf32> -> vector<1x128xf32>
    %c0_3 = arith.constant 0 : index
    %c0_4 = arith.constant 0 : index
    %3 = vector.load %arg3[%c0_3, %c0_4] : memref<1x128xf32, #tpu.memory_space<vmem>>, vector<1x128xf32>
    %4 = arith.addf %2, %3 : vector<1x128xf32>
    %c0_5 = arith.constant 0 : index
    %c0_6 = arith.constant 0 : index
    %5 = vector.load %arg4[%c0_5, %c0_6] : memref<1x128xf32, #tpu.memory_space<vmem>>, vector<1x128xf32>
    tpu.vector_store %arg4[%c0_5, %c0_6], %4 {strides = array<i32>} : memref<1x128xf32, #tpu.memory_space<vmem>>, vector<1x128xf32>,
    return
  }
  func.func @transform_0(%arg0: i32) -> (i32, i32) {
    %c0_i32 = arith.constant 0 : i32
    %c0_i32_0 = arith.constant 0 : i32
    return %arg0, %c0_i32 : i32, i32
  }
  func.func @transform_1(%arg0: i32) -> (i32, i32) {
    %c0_i32 = arith.constant 0 : i32
    %c0_i32_0 = arith.constant 0 : i32
    %c0_i32_1 = arith.constant 0 : i32
    return %c0_i32, %c0_i32_0 : i32, i32
  }
  func.func @transform_2(%arg0: i32) -> (i32, i32) {
    %c0_i32 = arith.constant 0 : i32
    %c0_i32_0 = arith.constant 0 : i32
    %c0_i32_1 = arith.constant 0 : i32
    return %c0_i32, %c0_i32_0 : i32, i32
  }
  func.func @transform_3(%arg0: i32) -> (i32, i32) {
    %c0_i32 = arith.constant 0 : i32
    %c0_i32_0 = arith.constant 0 : i32
    return %arg0, %c0_i32 : i32, i32
  }
}

</mosaic_0001>

<bundles_post_ra>
// kernel: tpu_custom_call.1
= control target key start
LH: loop header
LB: loop body
LE: loop exit
PB: predicated region body
PF: predicated region fallthrough
CT: control target
= control target key end

     0   :  { %8 = vsyncpa [#allocation3], 0  ;;  %s222_s0 = inlined_call_operand.hbm [shape: f32[1,128], index: 0, kind: input, shape index: {}]   ;;  %s223_s1 = inlined_call_operand.hbm [shape: f32[128,128], index: 1, kind: input, shape index: {}]   ;;  %s224_s2 = inlined_call_operand.vmem [shape: f32[1,128], index: 2, kind: input, shape index: {}]   ;;  %s225_s3 = inlined_call_operand.hbm [shape: f32[1,128], index: 3, kind: output, shape index: {}]  }
   0x1   :  { %9 = vsyncpa [#allocation6], 0 }
   0x2   :  { %10 = vsyncpa [#allocation4], 0  ;;  %s16_s14 = sshll.u32 %s222_s0, 4  ;;  %s185_s15 = smov [#allocation2]   ;;  %s17_s14 = int_to_ptr.hbm [resolvable:$true] %s16_s14 }
   0x3   :  { %s18_s16 = sshll.u32 %s185_s15, 4  ;;  %s26_s19 = sshll.u32 %s223_s1, 4  ;;  %s19_s16 = int_to_ptr.vmem [resolvable:$true] %s18_s16  ;;  %s27_s19 = int_to_ptr.hbm [resolvable:$true] %s26_s19 }
   0x4   :  { %21 = dma.hbm_to_vmem [thread:$0]  %s17_s14, 16, %s19_s16, [#allocation3]  }
   0x5   :  { %s186_s20 = smov [#allocation5]   ;;  %s187_s22 = smov 128  }
   0x6   :  { %s28_s21 = sshll.u32 %s186_s20, 4  ;;  %s188_s23 = smov 8   ;;  %s29_s21 = int_to_ptr.vmem [resolvable:$true] %s28_s21 }
   0x7   :  { %34 = dma.hbm_to_vmem [thread:$0]  %s27_s19, 2048, %s29_s21, [#allocation6], %s187_s22, %s187_s22, %s188_s23  }
   0x8   :  { %179 = dma.done.wait [#allocation3], 16  }
   0x9   :  { %180 = vsyncadd [#allocation3], 4294967280 }
   0xa   :  { %181 = dma.done.wait [#allocation6], 2048  }
   0xb   :  { %182 = vsyncadd [#allocation6], 4294965248  ;;  %v61_v0 = vld [vmem:[#allocation5 + $0x78] sm:$0xff]  ;;  %v60_v1 = vld [vmem:[#allocation5 + $0x70] sm:$0xff]  ;;  %s189_s24 = smov [#allocation7]   ;;  %s91_s28 = sshll.u32 %s225_s3, 4  ;;  %s92_s28 = int_to_ptr.hbm [resolvable:$true] %s91_s28 }
   0xc   :  { %63 = vmatpush.msra.mxu0 %v61_v0  ;;  %v59_v2 = vld [vmem:[#allocation5 + $0x68] sm:$0xff]  ;;  %v58_v3 = vld [vmem:[#allocation5 + $0x60] sm:$0xff]  ;;  %v57_v4 = vld [vmem:[#allocation5 + $0x58] sm:$0xff]  ;;  %s89_s25 = sshll.u32 %s189_s24, 4  ;;  %s90_s25 = int_to_ptr.vmem [resolvable:$true] %s89_s25 }
   0xd   :  { %v56_v5 = vld [vmem:[#allocation5 + $0x50] sm:$0xff]  ;;  %v55_v6 = vld [vmem:[#allocation5 + $0x48] sm:$0xff]  ;;  %v54_v7 = vld [vmem:[#allocation5 + $0x40] sm:$0xff] }
   0xe   :  { %64 = vmatpush.msra.mxu0 %v60_v1  ;;  %v53_v8 = vld [vmem:[#allocation5 + $0x38] sm:$0xff]  ;;  %v52_v9 = vld [vmem:[#allocation5 + $0x30] sm:$0xff]  ;;  %v51_v10 = vld [vmem:[#allocation5 + $0x28] sm:$0xff] }
   0xf   :  { %v50_v11 = vld [vmem:[#allocation5 + $0x20] sm:$0xff]  ;;  %v49_v12 = vld [vmem:[#allocation5 + $0x18] sm:$0xff]  ;;  %v48_v13 = vld [vmem:[#allocation5 + $0x10] sm:$0xff] }
  0x10   :  { %65 = vmatpush.msra.mxu0 %v59_v2  ;;  %v47_v14 = vld [vmem:[#allocation5 + $0x8] sm:$0xff]  ;;  %v46_v15 = vld [vmem:[#allocation5] sm:$0xff]  ;;  %v45_v16 = vld [vmem:[#allocation2] sm:$0x1] }
  0x11   :  { %v62_v17 = vld [vmem:[%s224_s2] sm:$0x1] }
  0x12   :  { %66 = vmatpush.msra.mxu0 %v58_v3 }
  0x14   :  { %67 = vmatpush.msra.mxu0 %v57_v4 }
  0x16   :  { %68 = vmatpush.msra.mxu0 %v56_v5 }
  0x18   :  { %69 = vmatpush.msra.mxu0 %v55_v6 }
  0x1a   :  { %70 = vmatpush.msra.mxu0 %v54_v7 }
  0x1c   :  { %71 = vmatpush.msra.mxu0 %v53_v8 }
  0x1e   :  { %72 = vmatpush.msra.mxu0 %v52_v9 }
  0x20   :  { %73 = vmatpush.msra.mxu0 %v51_v10 }
  0x22   :  { %74 = vmatpush.msra.mxu0 %v50_v11 }
  0x24   :  { %75 = vmatpush.msra.mxu0 %v49_v12 }
  0x26   :  { %76 = vmatpush.msra.mxu0 %v48_v13 }
  0x28   :  { %77 = vmatpush.msra.mxu0 %v47_v14 }
  0x2a   :  { %78 = vmatpush.msra.mxu0 %v46_v15 }
  0x2b   :  { %79 = vmatmul.f32.vlgmr.msra.gmra.mxu0 %v45_v16 }
  0xa8   :  { %v80_v18 = vpop.f32.mrf.mxu0 }
  0xa9   :  { %v81_v19 = vadd.f32 %v80_v18, %v62_v17 }
  0xab   :  { %83 = vst [vmem:[#allocation7] sm:$0x1] %v81_v19 }
  0xac   :  { %94 = dma.vmem_to_hbm [thread:$0]  %s90_s25, 16, %s92_s28, [#allocation4]  }
  0xad   :  { %183 = dma.done.wait [#allocation4], 16  }
  0xae   :  { %184 = vsyncadd [#allocation4], 4294967280 }
  0xaf   :  { %99 = vsyncpa [#allocation3], 1 }
  0xb0   :  { %100 = vsyncpa [#allocation6], 1 }
  0xb1   :  { %101 = vsyncpa [#allocation4], 1 }

</bundles_post_ra>
